<compile_context>
chip_gen: v7x
topology: tpu7x:2x2x1
jax: 0.10.0
libtpu: 0.0.40
codegen_flags: <defaults>
</compile_context>

<pallas_src>
import functools

import jax
import jax.numpy as jnp
from jax import lax
from jax.experimental import pallas as pl
from jax.experimental.pallas import tpu as pltpu


_INV_SQRT2 = 0.7071067811865476
_MIB = 1024 * 1024


# --------------------------------------------------------------------------- #
# Kernels
# --------------------------------------------------------------------------- #
def _ffn_chunk(x_ref, w1_ref, b1_ref, w2_ref):
    """One I-chunk of fc2(GELU(fc1(x))) with f32 accumulation."""
    h = jnp.dot(x_ref[...], w1_ref[...], preferred_element_type=jnp.float32)
    h = h + b1_ref[...].astype(jnp.float32)
    # Exact GELU (erf form) — matches torch.nn.GELU() default, elementwise in I.
    h = 0.5 * h * (1.0 + lax.erf(h * jnp.float32(_INV_SQRT2)))
    return jnp.dot(
        h.astype(w2_ref.dtype), w2_ref[...], preferred_element_type=jnp.float32
    )


def _ffn_kernel_f32_out(x_ref, w1_ref, b1_ref, w2_ref, b2_ref, o_ref):
    """f32 output: accumulate directly into the resident output tile."""
    k = pl.program_id(1)

    @pl.when(k == 0)
    def _():
        o_ref[...] = jnp.broadcast_to(
            b2_ref[...].astype(jnp.float32), o_ref.shape
        )

    o_ref[...] += _ffn_chunk(x_ref, w1_ref, b1_ref, w2_ref)


def _ffn_kernel_acc(x_ref, w1_ref, b1_ref, w2_ref, b2_ref, o_ref, acc_ref):
    """Non-f32 output: f32 VMEM accumulator, cast once at the last I chunk."""
    k = pl.program_id(1)

    @pl.when(k == 0)
    def _():
        acc_ref[...] = jnp.broadcast_to(
            b2_ref[...].astype(jnp.float32), acc_ref.shape
        )

    acc_ref[...] += _ffn_chunk(x_ref, w1_ref, b1_ref, w2_ref)

    @pl.when(k == pl.num_programs(1) - 1)
    def _():
        o_ref[...] = acc_ref[...].astype(o_ref.dtype)


# --------------------------------------------------------------------------- #
# Tiling / VMEM heuristics
# --------------------------------------------------------------------------- #
def _round_up(x, m):
    return ((x + m - 1) // m) * m


def _device_config():
    kind = ""
    try:
        kind = jax.devices()[0].device_kind.lower()
    except Exception:  # no TPU visible at trace time — use the conservative default
        pass
    if "v5 lite" in kind or "v5e" in kind or "v5lite" in kind:
        # 1 TC, 128 MiB VMEM; larger tk halves accumulator RMW steps (single vst slot).
        return dict(tm=256, tk=1024, vmem_cap=96 * _MIB, min_m_tiles=1)
    if "v6" in kind:
        # 1 TC, 128 MiB VMEM, 918 TF/s MXU: big token tile for arithmetic intensity.
        return dict(tm=1024, tk=1024, vmem_cap=100 * _MIB, min_m_tiles=1)
    if "7" in kind:
        # 2 TCs / chip, only 64 MiB VMEM per TC: tighter budget, keep >=2 token tiles.
        return dict(tm=512, tk=512, vmem_cap=48 * _MIB, min_m_tiles=2)
    # Unknown generation: conservative settings that are valid everywhere.
    return dict(tm=256, tk=512, vmem_cap=48 * _MIB, min_m_tiles=2)


def _tk_candidates(inner_dim, tk_target):
    """Descending I-chunk sizes: multiple-of-128 divisors of I (so no weight
    padding is ever needed), or the full I for small / odd I."""
    hi = (max(tk_target, 128) // 128) * 128
    if inner_dim % 128 == 0:
        cands = [
            d for d in range(min(inner_dim, hi), 127, -128) if inner_dim % d == 0
        ]
        if cands:
            return cands
    return [inner_dim]  # single full-width chunk (block == full dim is layout-legal)


def _tm_candidates(m_tokens, tm_target, min_m_tiles):
    """Descending token-tile sizes (multiples of 8)."""
    tm0 = min(max(tm_target, 8), _round_up(m_tokens, 8))
    if min_m_tiles > 1 and m_tokens >= 8 * min_m_tiles:
        # Keep at least `min_m_tiles` token tiles so every TensorCore gets work.
        tm0 = min(tm0, _round_up(-(-m_tokens // min_m_tiles), 8))
    tm0 = _round_up(tm0, 8)
    cands = []
    t = tm0
    while True:
        cands.append(t)
        if t <= 8:
            break
        t = max(8, _round_up(t // 2, 8))
    return cands


def _vmem_estimate(tm, tk, embed, in_itemsize, out_itemsize, need_acc):
    b = 2 * tm * embed * in_itemsize      # x tiles (double-buffered)
    b += 2 * embed * tk * in_itemsize     # W1 I-chunks
    b += 2 * tk * 4                       # b1 I-chunks (f32)
    b += 2 * tk * embed * in_itemsize     # W2 I-chunks
    b += 2 * embed * 4                    # b2 (f32)
    b += 2 * tm * embed * out_itemsize    # output tiles
    if need_acc:
        b += tm * embed * 4               # f32 accumulator scratch
    b += 2 * tm * tk * 4                  # f32 fc1/GELU intermediate (+ margin)
    b += 2 * _MIB                         # Mosaic internal scratch headroom
    return b


# --------------------------------------------------------------------------- #
# Wrapper
# --------------------------------------------------------------------------- #
@functools.partial(jax.jit, static_argnames=("tm", "tk", "compute_dtype"))
def feed_forward(x, w1, b1, w2, b2, *, tm=None, tk=None, compute_dtype=jnp.bfloat16):
    """Fused FFN: fc2(GELU(fc1(x))).

    x: (B, S, E).  w1: (E, I), b1: (I,), w2: (I, E), b2: (E,).
    compute_dtype: dtype of the matmul operands (weights / activations are cast
      once before the kernel); accumulation and GELU are always f32.  Pass
      jnp.float32 for a bit-tight match to the f32 reference.
    """
    B, S, E = x.shape
    I = w1.shape[1]
    M = B * S
    out_dtype = x.dtype

    cfg = _device_config()
    tm_target = int(tm) if tm is not None else cfg["tm"]
    tk_target = int(tk) if tk is not None else cfg["tk"]

    compute_dtype = jnp.dtype(compute_dtype)
    in_itemsize = compute_dtype.itemsize
    out_itemsize = jnp.dtype(out_dtype).itemsize
    need_acc = out_dtype != jnp.float32

    # ---- tile selection: largest tiles whose VMEM estimate fits the cap ----
    tk_cands = _tk_candidates(I, tk_target)
    tm_cands = _tm_candidates(M, tm_target, cfg["min_m_tiles"])

    chosen = None
    for tm_c in tm_cands:                    # keep tm large (arithmetic intensity),
        for tk_c in tk_cands:                # shrink tk first, then tm.
            if (
                _vmem_estimate(tm_c, tk_c, E, in_itemsize, out_itemsize, need_acc)
                <= cfg["vmem_cap"]
            ):
                chosen = (tm_c, tk_c)
                break
        if chosen is not None:
            break
    if chosen is None:                       # nothing fits: take the smallest tiles
        chosen = (tm_cands[-1], tk_cands[-1])
    tm_c, tk_c = chosen

    m_pad = _round_up(M, tm_c)
    grid = (m_pad // tm_c, I // tk_c)

    vmem_est = _vmem_estimate(tm_c, tk_c, E, in_itemsize, out_itemsize, need_acc)
    vmem_limit = int(min(max(vmem_est, 32 * _MIB), cfg["vmem_cap"]))

    # ---- cast / reshape operands (weights are NOT padded or copied) --------
    x2d = x.reshape(M, E).astype(compute_dtype)
    if m_pad != M:
        x2d = jnp.pad(x2d, ((0, m_pad - M), (0, 0)))   # pad tokens only
    w1c = w1.astype(compute_dtype)
    w2c = w2.astype(compute_dtype)
    b1_2d = b1.reshape(1, I).astype(jnp.float32)
    b2_2d = b2.reshape(1, E).astype(jnp.float32)

    in_specs = [
        pl.BlockSpec((tm_c, E), lambda i, k: (i, 0)),   # x token tile
        pl.BlockSpec((E, tk_c), lambda i, k: (0, k)),   # W1 I-chunk
        pl.BlockSpec((1, tk_c), lambda i, k: (0, k)),   # b1 I-chunk
        pl.BlockSpec((tk_c, E), lambda i, k: (k, 0)),   # W2 I-chunk
        pl.BlockSpec((1, E), lambda i, k: (0, 0)),      # b2
    ]
    out_spec = pl.BlockSpec((tm_c, E), lambda i, k: (i, 0))

    if need_acc:
        kernel = _ffn_kernel_acc
        scratch = [pltpu.VMEM((tm_c, E), jnp.float32)]
        out_kernel_dtype = out_dtype
    else:
        kernel = _ffn_kernel_f32_out
        scratch = []
        out_kernel_dtype = jnp.float32

    out2d = pl.pallas_call(
        kernel,
        out_shape=jax.ShapeDtypeStruct((m_pad, E), out_kernel_dtype),
        grid_spec=pltpu.PrefetchScalarGridSpec(
            num_scalar_prefetch=0,
            grid=grid,
            in_specs=in_specs,
            out_specs=out_spec,
            scratch_shapes=scratch,
        ),
        compiler_params=pltpu.CompilerParams(
            dimension_semantics=("parallel", "arbitrary"),
            vmem_limit_bytes=vmem_limit,
        ),
    )(x2d, w1c, b1_2d, w2c, b2_2d)

    return out2d[:M].reshape(B, S, E).astype(out_dtype)


# --------------------------------------------------------------------------- #
# Reference + self-test
# --------------------------------------------------------------------------- #
def _reference(x, w1, b1, w2, b2):
    h = jnp.einsum("bse,ei->bsi", x, w1) + b1
    h = 0.5 * h * (1.0 + lax.erf(h / jnp.sqrt(2.0)))
    return jnp.einsum("bsi,ie->bse", h, w2) + b2


if __name__ == "__main__":
    batch, seq, embed_dim, inner_dim = 2, 8, 32, 64

    key = jax.random.PRNGKey(0)
    kx, k1, k2, k3, k4 = jax.random.split(key, 5)

    x = jax.random.normal(kx, (batch, seq, embed_dim), dtype=jnp.float32)

    # Deterministic parameter init (uniform, roughly PyTorch Linear scale).
    lim1 = 1.0 / jnp.sqrt(embed_dim)
    lim2 = 1.0 / jnp.sqrt(inner_dim)
    w1 = jax.random.uniform(k1, (embed_dim, inner_dim), jnp.float32, -lim1, lim1)
    b1 = jax.random.uniform(k2, (inner_dim,), jnp.float32, -lim1, lim1)
    w2 = jax.random.uniform(k3, (inner_dim, embed_dim), jnp.float32, -lim2, lim2)
    b2 = jax.random.uniform(k4, (embed_dim,), jnp.float32, -lim2, lim2)

    ref = _reference(x, w1, b1, w2, b2)

    # Fast path: bf16 matmul operands, f32 accumulation / GELU (default).
    out_fast = jax.block_until_ready(feed_forward(x, w1, b1, w2, b2))
    assert out_fast.shape == (batch, seq, embed_dim)
    assert out_fast.dtype == x.dtype
    assert jnp.allclose(out_fast, ref, atol=3e-2, rtol=3e-2)

    # Exact path: f32 end-to-end, tight tolerance vs. the f32 reference.
    out_exact = jax.block_until_ready(
        feed_forward(x, w1, b1, w2, b2, compute_dtype=jnp.float32)
    )
    assert jnp.allclose(out_exact, ref, atol=1e-5, rtol=1e-5)

    # bf16 activations in / bf16 out (exercises the f32-scratch accumulator path).
    out_bf16 = jax.block_until_ready(
        feed_forward(x.astype(jnp.bfloat16), w1, b1, w2, b2)
    )
    assert out_bf16.dtype == jnp.bfloat16
    assert jnp.allclose(out_bf16.astype(jnp.float32), ref, atol=6e-2, rtol=6e-2)

    print("KERNEL_OK")
</pallas_src>

<mosaic_0001>
module attributes {stable_mosaic.version = 11 : i64} {
  func.func @_ffn_kernel_f32_out(%arg0: i32, %arg1: i32, %arg2: memref<8x32xbf16, #tpu.memory_space<vmem>>, %arg3: memref<32x64xbf16, #tpu.memory_space<vmem>>, %arg4: memref<1x64xf32, #tpu.memory_space<vmem>>, %arg5: memref<64x32xbf16, #tpu.memory_space<vmem>>, %arg6: memref<1x32xf32, #tpu.memory_space<vmem>>, %arg7: memref<8x32xf32, #tpu.memory_space<vmem>>) attributes {dimension_semantics = [#tpu.dimension_semantics<parallel>, #tpu.dimension_semantics<arbitrary>], iteration_bounds = array<i64: 2, 1>, scalar_prefetch = 0 : i64, scratch_operands = 0 : i64, tpu.core_type = #tpu.core_type<tc>, window_params = [{transform_indices = @transform_0, window_bounds = array<i64: 8, 32>}, {transform_indices = @transform_1, window_bounds = array<i64: 32, 64>}, {transform_indices = @transform_2, window_bounds = array<i64: 1, 64>}, {transform_indices = @transform_3, window_bounds = array<i64: 64, 32>}, {pipeline_mode = #tpu.pipeline_mode<synchronous>, transform_indices = @transform_4, window_bounds = array<i64: 1, 32>}, {transform_indices = @transform_5, window_bounds = array<i64: 8, 32>}]} {
    %c0_i32 = arith.constant 0 : i32
    %0 = arith.cmpi eq, %arg1, %c0_i32 : i32
    %1 = arith.extui %0 : i1 to i32
    %c0_i32_0 = arith.constant 0 : i32
    %2 = arith.cmpi ne, %1, %c0_i32_0 : i32
    scf.if %2 {
      %c0_16 = arith.constant 0 : index
      %c0_17 = arith.constant 0 : index
      %23 = vector.load %arg6[%c0_16, %c0_17] : memref<1x32xf32, #tpu.memory_space<vmem>>, vector<1x32xf32>
      %24 = vector.shape_cast %23 : vector<1x32xf32> to vector<1x32xf32>
      %25 = vector.broadcast %24 : vector<1x32xf32> to vector<8x32xf32>
      %c0_18 = arith.constant 0 : index
      %c0_19 = arith.constant 0 : index
      %26 = vector.load %arg7[%c0_18, %c0_19] : memref<8x32xf32, #tpu.memory_space<vmem>>, vector<8x32xf32>
      tpu.vector_store %arg7[%c0_18, %c0_19], %25 {strides = array<i32>} : memref<8x32xf32, #tpu.memory_space<vmem>>, vector<8x32xf32>,
    } else {
    }
    %c0 = arith.constant 0 : index
    %c0_1 = arith.constant 0 : index
    %3 = vector.load %arg7[%c0, %c0_1] : memref<8x32xf32, #tpu.memory_space<vmem>>, vector<8x32xf32>
    %c0_2 = arith.constant 0 : index
    %c0_3 = arith.constant 0 : index
    %4 = vector.load %arg2[%c0_2, %c0_3] : memref<8x32xbf16, #tpu.memory_space<vmem>>, vector<8x32xbf16>
    %c0_4 = arith.constant 0 : index
    %c0_5 = arith.constant 0 : index
    %5 = vector.load %arg3[%c0_4, %c0_5] : memref<32x64xbf16, #tpu.memory_space<vmem>>, vector<32x64xbf16>
    %cst = arith.constant dense<0.000000e+00> : vector<8x64xf32>
    %6 = tpu.matmul %4, %5, %cst {dimension_numbers = #tpu.dot_dimension_numbers<[1], [0], [0], [1], [0, 0, 1, 1], [], []>} : vector<8x32xbf16>, vector<32x64xbf16>, vector<8x64xf32> -> vector<8x64xf32>
    %c0_6 = arith.constant 0 : index
    %c0_7 = arith.constant 0 : index
    %7 = vector.load %arg4[%c0_6, %c0_7] : memref<1x64xf32, #tpu.memory_space<vmem>>, vector<1x64xf32>
    %8 = vector.broadcast %7 : vector<1x64xf32> to vector<8x64xf32>
    %9 = arith.addf %6, %8 : vector<8x64xf32>
    %cst_8 = arith.constant 5.000000e-01 : f32
    %10 = vector.broadcast %cst_8 : f32 to vector<8x64xf32>
    %11 = arith.mulf %10, %9 : vector<8x64xf32>
    %cst_9 = arith.constant 0.707106769 : f32
    %12 = vector.broadcast %cst_9 : f32 to vector<8x64xf32>
    %13 = arith.mulf %9, %12 : vector<8x64xf32>
    %14 = math.erf %13 : vector<8x64xf32>
    %cst_10 = arith.constant 1.000000e+00 : f32
    %15 = vector.broadcast %cst_10 : f32 to vector<8x64xf32>
    %16 = arith.addf %15, %14 : vector<8x64xf32>
    %17 = arith.mulf %11, %16 : vector<8x64xf32>
    %18 = arith.truncf %17 : vector<8x64xf32> to vector<8x64xbf16>
    %c0_11 = arith.constant 0 : index
    %c0_12 = arith.constant 0 : index
    %19 = vector.load %arg5[%c0_11, %c0_12] : memref<64x32xbf16, #tpu.memory_space<vmem>>, vector<64x32xbf16>
    %cst_13 = arith.constant dense<0.000000e+00> : vector<8x32xf32>
    %20 = tpu.matmul %18, %19, %cst_13 {dimension_numbers = #tpu.dot_dimension_numbers<[1], [0], [0], [1], [0, 0, 1, 1], [], []>} : vector<8x64xbf16>, vector<64x32xbf16>, vector<8x32xf32> -> vector<8x32xf32>
    %21 = arith.addf %3, %20 : vector<8x32xf32>
    %c0_14 = arith.constant 0 : index
    %c0_15 = arith.constant 0 : index
    %22 = vector.load %arg7[%c0_14, %c0_15] : memref<8x32xf32, #tpu.memory_space<vmem>>, vector<8x32xf32>
    tpu.vector_store %arg7[%c0_14, %c0_15], %21 {strides = array<i32>} : memref<8x32xf32, #tpu.memory_space<vmem>>, vector<8x32xf32>,
    return
  }
  func.func @transform_0(%arg0: i32, %arg1: i32) -> (i32, i32) {
    %c0_i32 = arith.constant 0 : i32
    %c0_i32_0 = arith.constant 0 : i32
    return %arg0, %c0_i32 : i32, i32
  }
  func.func @transform_1(%arg0: i32, %arg1: i32) -> (i32, i32) {
    %c0_i32 = arith.constant 0 : i32
    %c0_i32_0 = arith.constant 0 : i32
    return %c0_i32, %arg1 : i32, i32
  }
  func.func @transform_2(%arg0: i32, %arg1: i32) -> (i32, i32) {
    %c0_i32 = arith.constant 0 : i32
    %c0_i32_0 = arith.constant 0 : i32
    return %c0_i32, %arg1 : i32, i32
  }
  func.func @transform_3(%arg0: i32, %arg1: i32) -> (i32, i32) {
    %c0_i32 = arith.constant 0 : i32
    %c0_i32_0 = arith.constant 0 : i32
    return %arg1, %c0_i32 : i32, i32
  }
  func.func @transform_4(%arg0: i32, %arg1: i32) -> (i32, i32) {
    %c0_i32 = arith.constant 0 : i32
    %c0_i32_0 = arith.constant 0 : i32
    %c0_i32_1 = arith.constant 0 : i32
    return %c0_i32, %c0_i32_0 : i32, i32
  }
  func.func @transform_5(%arg0: i32, %arg1: i32) -> (i32, i32) {
    %c0_i32 = arith.constant 0 : i32
    %c0_i32_0 = arith.constant 0 : i32
    return %arg0, %c0_i32 : i32, i32
  }
}

</mosaic_0001>

<bundles_post_ra>
// kernel: feed_forward.1
= control target key start
LH: loop header
LB: loop body
LE: loop exit
PB: predicated region body
PF: predicated region fallthrough
CT: control target
= control target key end

     0   :  { %10 = vsyncpa [#allocation3], 0  ;;  %s948_s0 = inlined_call_operand.vmem [shape: bf16[16,32], index: 0, kind: input, shape index: {}]   ;;  %s949_s1 = inlined_call_operand.vmem [shape: bf16[32,64], index: 1, kind: input, shape index: {}]   ;;  %s950_s2 = inlined_call_operand.vmem [shape: f32[1,64], index: 2, kind: input, shape index: {}]   ;;  %s951_s3 = inlined_call_operand.vmem [shape: bf16[64,32], index: 3, kind: input, shape index: {}]   ;;  %s952_s4 = inlined_call_operand.vmem [shape: f32[1,32], index: 4, kind: input, shape index: {}]   ;;  %s953_s5 = inlined_call_operand.hbm [shape: f32[16,32], index: 5, kind: output, shape index: {}]  }
   0x1   :  { %12 = vsyncpa [#allocation3 + $0x1], 0  ;;  %s805_s18 = smov 0   ;;  %s807_s19 = smov 0  }
   0x2   :  { %s809_s20 = smov 0   ;;  %s811_s21 = smov 0  }
   0x3   :  { %s813_s22 = smov 0   ;;  %s815_s23 = smov 0  }
   0x4 LB: > { %s575_s24 = sadd.s32 4294967295, %s770_s23   ;;  %s576_s25 = sadd.s32 4294967294, %s770_s23   ;;  %s770_s23 = sphi %s815_s23, %s18_s23   ;;  %s766_s22 = sphi %s813_s22, %s960_s22   ;;  %s762_s21 = sphi %s811_s21, %s959_s21   ;;  %s758_s20 = sphi %s809_s20, %s958_s20   ;;  %s754_s19 = sphi %s807_s19, %s957_s19   ;;  %s750_s18 = sphi %s805_s18, %s956_s18  }
   0x5   : > { %s30_s26 = sadd.s32 1, %s766_s22  ;;  %s162_s27 = sadd.s32 1, %s758_s20 }
   0x6   : > { %p32_p0 = scmp.ge.s32.totalorder %s30_s26, 2  ;;  %p172_p1 = scmp.ne.s32.totalorder %s758_s20, %s754_s19 }
   0x7   : > { %p173_p2 = scmp.eq.s32.totalorder %s575_s24, 1  ;;  %p178_p3 = scmp.ne.s32.totalorder %s754_s19, %s750_s18 }
   0x8   : > { %s962_s26 = smov (%p32_p0, %s30_s26), 0  ;;  %p179_p5 = scmp.eq.s32.totalorder %s576_s25, 1 }
   0x9   : > { %p845_p4 = por %p173_p2, %p172_p1  ;;  %s159_s29 = ssub.s32 %s766_s22, %s962_s26 }
   0xa   : > { %p582_p6 = scmp.ge.s32.totalorder %s770_s23, 1  ;;  %p160_p7 = scmp.eq.s32.totalorder %s159_s29, 0 }
   0xb   : > { %p852_p8 = por %p179_p5, %p178_p3  ;;  %p229_p9 = scmp.lt.s32.totalorder %s770_s23, 3 }
   0xc   : > { %s858_s6 = scalar_select %p160_p7, %s758_s20, %s162_s27  }
   0xd   : > { %p230_p10 = pnand %p582_p6, %p229_p9 }
   0xe   : > { %v684_v0 = vld [vmem:[%s949_s1] sm:$0xff] (!%p230_p10)   ;;  %v772_v1 = vmov (!%p230_p10), 0.0   ;;  %v685_v2 = vld [vmem:[%s949_s1 + $0x8] sm:$0xff] (!%p230_p10)   ;;  %vm773_vm0 = vmmov (!%p230_p10), 0   ;;  %p268_p11 = scmp.lt.s32.totalorder (!%p230_p10), %s762_s21, 1  ;;  %vm297_vm1 = vcmask (!%p230_p10), 261120  }
   0xf   : > { %233 = sbr.rel (%p230_p10) target bundleno = 488 (0x1e8), region = 40  ;;  %607 = vmatprep.subr.bf16.mxu0 (!%p230_p10), %v772_v1  ;;  %615 = vmatprep.subr.bf16.mxu1 (!%p230_p10), %v772_v1  ;;  %v686_v4 = vld [vmem:[%s951_s3] sm:$0xff] (!%p230_p10)   ;;  %v687_v5 = vld [vmem:[%s951_s3 + $0x8] sm:$0xff] (!%p230_p10)   ;;  %v688_v6 = vld [vmem:[%s951_s3 + $0x10] sm:$0xff] (!%p230_p10)   ;;  %s265_s9 = sand.u32 (!%p230_p10), 1, %s754_s19   ;;  %vm406_vm2 = vcmask (!%p230_p10), 523264  }
  0x10   : > { %608 = vmatpush3.bf16.msra.mxu0 (!%p230_p10), %v684_v0  ;;  %611 = vmatprep.mubr.msk.bf16.mxu0 (!%p230_p10), %vm773_vm0, %v772_v1  ;;  %v689_v7 = vld [vmem:[%s951_s3 + $0x18] sm:$0xff] (!%p230_p10)   ;;  %v585_v8 = vld [vmem:[%s952_s4] ss:$0 sm:$0xff] (!%p230_p10)  ;;  %s596_s16 = sshll.u32 (!%p230_p10), %s762_s21, 7  ;;  %s774_s7 = smov (!%p230_p10), [#allocation2]  }
  0x11   : > { %609 = vmatprep.subr.bf16.mxu0 (!%p230_p10), %v772_v1  ;;  %623 = vmatprep.mubr.msk.bf16.mxu1 (!%p230_p10), %vm773_vm0, %v772_v1  ;;  %v586_v9 = vld [vmem:[%s950_s2] ss:$0 sm:$0xff] (!%p230_p10)  ;;  %s898_s27 = scalar_lea.hbm (!%p230_p10), %s953_s5, %s596_s16  ;;  %s696_s8 = sshll.u32 (!%p230_p10), %s774_s7, 4  ;;  %s697_s8 = int_to_ptr.vmem [resolvable:$false] %s696_s8 }
  0x12   : > { %616 = vmatpush3.bf16.msra.mxu1 (!%p230_p10), %v686_v4  ;;  %s698_s10 = scalar_lea.vmem (!%p230_p10), %s697_s8, 256 }
  0x13   : > { %617 = vmatprep.subr.bf16.mxu1 (!%p230_p10), %v772_v1 }
  0x14   : > { %610 = vmatpush3.bf16.msra.mxu0 (!%p230_p10), %v685_v2 }
  0x16   : > { %s269_s11 = scalar_select %p268_p11, %s762_s21, 1  ;;  %618 = vmatpush3.bf16.msra.mxu1 %v687_v5 }
  0x17   : > { %619 = vmatprep.subr.bf16.mxu1 %v772_v1  ;;  %s453_s21 = scalar_lea.sflag [#allocation3], %s265_s9 }
  0x18   : > { %s584_s12 = sshll.u32 %s269_s11, 2 }
  0x19   : > { %s271_s15 = scalar_lea.vmem %s948_s0, %s584_s12  ;;  %s583_s12 = sshll.u32 %s265_s9, 3 }
  0x1a   : > { %v300_v3 = vld [vmem:[%s271_s15] sm:$0xf]  ;;  %620 = vmatpush3.bf16.msra.mxu1 %v688_v6  ;;  %s267_s13 = scalar_lea.vmem [#allocation2], %s583_s12 }
  0x1b   : > { %612 = vmatmul.mubr.msk.bf16.vlgmr.msra.gmra.mrb[0].mxu0 %vm297_vm1, %v300_v3  ;;  %621 = vmatprep.subr.bf16.mxu1 %v772_v1  ;;  %298 = vst.msk [vmem:[%s267_s13] sm:$0xff] %vm297_vm1, %v585_v8  ;;  %s466_s17 = sshll.u32 %s267_s13, 4  ;;  %s900_s17 = int_to_ptr.vmem [resolvable:$true] %s466_s17 }
  0x1c   : > { %s692_s29 = scalar_lea.vmem %s900_s17, 128  ;;  %p699_p1 = scmp.lt.s32.totalorder %s900_s17, %s697_s8 }
  0x1d   : > { %p693_p12 = scmp.ne.s32.totalorder %s900_s17, %s692_s29  ;;  %p700_p2 = scmp.lt.s32.totalorder %s698_s10, %s692_s29 }
  0x1e   : > { %622 = vmatpush3.bf16.msra.mxu1 %v689_v7 }
  0x1f   : > { %p694_p13 = pnand %p693_p12, %p845_p4  ;;  %p701_p3 = por %p700_p2, %p699_p1 }
  0x21   : > { %p695_p0 = pneg %p694_p13 }
  0x22   : > { %v299_v21 = vld [vmem:[%s267_s13] sm:$0xff] }
  0x23   : > { %p702_p5 = pnand %p701_p3, %p695_p0 }
  0xee   : > { %v362_v10 = vpop.f32.mrb[0].mxu0 }
  0xef   : > { %v363_v11 = vadd.f32 %v586_v9, %v362_v10  ;;  %v613_v12 = vpop.f32.mrb[1].mxu0 }
  0xf0   : > { %v365_v13 = vpop.f32.mrb[2].mxu0 }
  0xf1   : > { %v369_v14 = vmul.f32 0.70710677, %v363_v11  ;;  %v614_v15 = vpop.f32.mrb[3].mxu0  ;;  %v368_v17 = vmul.f32 0.5, %v363_v11 }
  0xf3   : > { %690 = verf.f32 %v369_v14 }
  0xfd   : > { %v691_v16 = vpop.eup %690 }
  0xfe   : > { %v371_v18 = vadd.f32 1.0, %v691_v16 }
 0x100   : > { %v372_v19 = vmul.f32 %v371_v18, %v368_v17 }
 0x102   : > { %v373_v20 = vpack.c.bf16 %v372_v19, %v372_v19 }
 0x104   : > { %624 = vmatmul.mubr.msk.bf16.vlgmr.msra.gmra.mrb[0].mxu1 %vm406_vm2, %v373_v20 }
 0x1d7   : > { %v444_v22 = vpop.f32.mrb[0].mxu1 }
 0x1d8   : > { %v450_v23 = vadd.f32 %v444_v22, %v299_v21  ;;  %v625_v24 = vpop.f32.mrb[1].mxu1 }
 0x1d9   : > { %v447_v25 = vpop.f32.mrb[2].mxu1 }
 0x1da   : > { %451 = vst.msk [vmem:[%s267_s13] sm:$0xff] %vm297_vm1, %v450_v23  ;;  %v626_v26 = vpop.f32.mrb[3].mxu1 }
 0x1db   : > { %705 = shalt.err (!%p702_p5)
}
 0x1dc   : > { %s706_s9 = scalar_lea.hbm %s898_s27, 128  ;;  %s710_s13 = scalar_lea.hbm %s953_s5, 256 }
 0x1dd   : > { %p707_p6 = scmp.ne.s32.totalorder %s898_s27, %s706_s9  ;;  %p711_p10 = scmp.lt.u32.totalorder %s898_s27, %s953_s5 }
 0x1de   : > { %p712_p11 = scmp.lt.u32.totalorder %s710_s13, %s706_s9  ;;  %p714_p13 = scmp.lt.u32.totalorder %s706_s9, %s898_s27 }
 0x1df   : > { %p708_p7 = pnand %p707_p6, %p845_p4 }
 0x1e0   : > { %p713_p12 = por %p712_p11, %p711_p10 }
 0x1e1   : > { %p709_p9 = pneg %p708_p7 }
 0x1e2   : > { %p715_p0 = por %p714_p13, %p713_p12 }
 0x1e4   : > { %p716_p1 = pnand %p715_p0, %p709_p9 }
 0x1e6   : > { %719 = shalt.err (!%p716_p1)
}
 0x1e7   : > { %627 = dma.vmem_to_hbm [thread:$0]  (%p845_p4), %s900_s17, 128, %s898_s27, %s453_s21  }
 0x1e8 PF: > { %p633_p2 = scmp.ge.s32.totalorder %s770_s23, 2  ;;  %s478_s16 = sand.u32 1, %s750_s18  }
 0x1e9   : > { %s479_s24 = scalar_lea.sflag [#allocation3], %s478_s16 }
 0x1ea   : > { %p630_p3 = pnand %p633_p2, %p852_p8 }
 0x1ec   : > { %745 = dma.done.wait (!%p630_p3), %s479_s24, 128  }
 0x1ed   : > { %747 = vsyncadd (!%p630_p3), %s479_s24, 4294967168  ;;  %s18_s23 = sadd.s32 1, %s770_s23   ;;  %s956_s18 = smov %s754_s19 }
 0x1ee   : > { %p15_p5 = scmp.ge.s32.totalorder %s18_s23, 4   ;;  %s957_s19 = smov %s758_s20 }
 0x1ef   : > { %s958_s20 = smov %s858_s6  ;;  %s959_s21 = smov %s766_s22 }
 0x1f0   : > { %s960_s22 = smov %s962_s26  ;;  %17 = sbr.rel (!%p15_p5) target bundleno = 4 (0x4), region = 88 }
 0x1f7   :  { %484 = vsyncpa [#allocation3], 1 }
 0x1f8   :  { %486 = vsyncpa [#allocation3 + $0x1], 1 }

</bundles_post_ra>
